<compile_context>
chip_gen: v6e
topology: v6e:2x2x1
jax: 0.10.0
libtpu: 0.0.40
codegen_flags: <defaults>
</compile_context>

<pallas_src>
import functools

import jax
import jax.numpy as jnp
from jax.experimental import pallas as pl
from jax.experimental.pallas import tpu as pltpu


def _cdiv(a, b):
    return -(-a // b)


def _round_up(x, m):
    return ((x + m - 1) // m) * m


@functools.lru_cache(maxsize=1)
def _vmem_capacity_bytes():
    try:
        return int(pltpu.get_tpu_info().vmem_capacity_bytes)
    except Exception:
        return 64 << 20          # conservative fallback (v7x per-TensorCore VMEM)


def _row_budget(D, M_out, in_bytes, out_bytes, max_rows=None):
    """Largest 8-aligned row tile whose double-buffered q + out rows (plus the
    resident emb tile, bias row and compiler scratch) fit the scoped VMEM."""
    cap = _vmem_capacity_bytes()
    scope = min((cap * 3) // 4, 64 << 20)      # ~48 MiB on v7x, 64 MiB on v5e/v6e
    fixed = 2 * D * M_out * in_bytes           # double-buffered resident emb tile
    fixed += 2 * M_out * 4                     # bias row
    fixed += 2 << 20                           # compiler-internal scratch headroom
    per_row = 2 * (D * in_bytes + M_out * out_bytes)
    rows = max(8, (scope - fixed) // per_row)
    rows = min(rows, 1024)
    if max_rows is not None:
        rows = min(rows, max(8, max_rows))
    rows = (rows // 8) * 8
    return rows, cap, fixed, per_row


def _balance_rows(total, rows_max):
    """Split `total` rows into balanced, 8-aligned tiles of at most ~rows_max."""
    if total <= rows_max:
        return total, 1
    n = _cdiv(total, rows_max)
    t = _round_up(_cdiv(total, n), 8)
    return t, _cdiv(total, t)


# ---------------------------------------------------------------------------
# Pallas kernel: logits tile = q_rows @ emb  (+ hoisted -1e8 length-mask row)
# ---------------------------------------------------------------------------
def _pos_logits_kernel(q_ref, e_ref, bias_ref, o_ref):
    # q_ref: (rows, D)   e_ref: (D, M_out)   bias_ref: (1, M_out) f32
    logits = jax.lax.dot_general(
        q_ref[...], e_ref[...],
        dimension_numbers=(((1,), (0,)), ((), ())),
        preferred_element_type=jnp.float32)
    o_ref[...] = (logits + bias_ref[...]).astype(o_ref.dtype)


def _logits_per_head(q_bhld, e_hdm, bias, out_dtype, max_rows=None):
    """q: (B, H, L, D), e: (H, D, M_out), bias: (1, M_out) -> (B, H, L, M_out)."""
    B, H, L, D = q_bhld.shape
    M = e_hdm.shape[-1]
    in_b = jnp.dtype(q_bhld.dtype).itemsize
    out_b = jnp.dtype(out_dtype).itemsize
    rows_max, cap, fixed, per_row = _row_budget(D, M, in_b, out_b, max_rows)
    t_l, n_l = _balance_rows(L, rows_max)
    if H * B * n_l < 2 and L >= 16:            # keep both v7x TensorCores busy
        t_l, n_l = _balance_rows(L, _round_up(_cdiv(L, 2), 8))
    vmem_limit = int(min(cap, max(32 << 20, fixed + per_row * t_l + (8 << 20))))
    return pl.pallas_call(
        _pos_logits_kernel,
        out_shape=jax.ShapeDtypeStruct((B, H, L, M), out_dtype),
        grid=(H, B, n_l),
        in_specs=[
            # query row tile for head h / batch b / row-block l
            pl.BlockSpec((None, None, t_l, D), lambda h, b, l: (b, h, l, 0)),
            # pre-transposed relative embeddings: resident across (b, l)
            pl.BlockSpec((None, D, M), lambda h, b, l: (h, 0, 0)),
            # hoisted -1e8 length-mask bias row: resident across the whole grid
            pl.BlockSpec((1, M), lambda h, b, l: (0, 0)),
        ],
        # write straight into (B, H, L, M_out) -> no post-kernel transpose
        out_specs=pl.BlockSpec((None, None, t_l, M), lambda h, b, l: (b, h, l, 0)),
        compiler_params=pltpu.CompilerParams(
            dimension_semantics=("parallel", "parallel", "parallel"),
            vmem_limit_bytes=vmem_limit),
    )(q_bhld, e_hdm, bias)


def _logits_shared(q_rd, e_dm, bias, out_dtype, max_rows=None):
    """q: (R, D), e: (D, M_out), bias: (1, M_out) -> (R, M_out).  Used when all
    heads share one embedding table: (batch*heads, L) rows are merged."""
    R, D = q_rd.shape
    M = e_dm.shape[-1]
    in_b = jnp.dtype(q_rd.dtype).itemsize
    out_b = jnp.dtype(out_dtype).itemsize
    rows_max, cap, fixed, per_row = _row_budget(D, M, in_b, out_b, max_rows)
    t_r, n_r = _balance_rows(R, rows_max)
    if n_r < 2 and R >= 16:                    # keep both v7x TensorCores busy
        t_r, n_r = _balance_rows(R, _round_up(_cdiv(R, 2), 8))
    vmem_limit = int(min(cap, max(32 << 20, fixed + per_row * t_r + (8 << 20))))
    return pl.pallas_call(
        _pos_logits_kernel,
        out_shape=jax.ShapeDtypeStruct((R, M), out_dtype),
        grid=(n_r,),
        in_specs=[
            pl.BlockSpec((t_r, D), lambda r: (r, 0)),
            pl.BlockSpec((D, M), lambda r: (0, 0)),
            pl.BlockSpec((1, M), lambda r: (0, 0)),
        ],
        out_specs=pl.BlockSpec((t_r, M), lambda r: (r, 0)),
        compiler_params=pltpu.CompilerParams(
            dimension_semantics=("parallel",),
            vmem_limit_bytes=vmem_limit),
    )(q_rd, e_dm, bias)


# ---------------------------------------------------------------------------
# Module (parameter setup + thin glue; the hot matmul runs in the kernel)
# ---------------------------------------------------------------------------
class LearnedRelativePositionalEmbedding:
    def __init__(self, max_relative_pos, num_heads, embedding_dim,
                 unmasked=False, heads_share_embeddings=False, add_to_values=False,
                 *, key, compute_dtype=jnp.bfloat16, logits_dtype=jnp.float32,
                 max_rows=None):
        self.max_relative_pos = max_relative_pos
        self.num_heads = num_heads
        self.embedding_dim = embedding_dim
        self.unmasked = unmasked
        self.heads_share_embeddings = heads_share_embeddings
        self.add_to_values = add_to_values
        self.compute_dtype = compute_dtype      # MXU input dtype (None -> query dtype)
        self.logits_dtype = logits_dtype        # kernel output dtype knob
        self.max_rows = max_rows                # optional row-tile cap (testing/tuning)

        num_embeddings = 2 * max_relative_pos - 1 if unmasked else max_relative_pos
        last = 2 if add_to_values else 1
        if heads_share_embeddings:
            shape = (num_embeddings, embedding_dim, last)
        else:
            shape = (num_heads, num_embeddings, embedding_dim, last)
        std = embedding_dim ** (-0.5)
        self.embeddings = std * jax.random.normal(key, shape, dtype=jnp.float32)

    # -- forward --------------------------------------------------------
    def __call__(self, query, saved_state=None):
        # query: (length, batch*num_heads, embed_dim)
        if saved_state is not None and "prev_key" in saved_state:
            # TODO(synk): decoder incremental-step path (prev_key) not implemented.
            raise NotImplementedError("decoder incremental step not supported")
        length = query.shape[0]
        used = self.get_embeddings_for_query(length)
        values_embeddings = used[..., 1] if self.add_to_values else None
        key_embeddings = used[..., 0]
        logits = self._positional_logits_absolute(query, key_embeddings, length)
        return logits, values_embeddings

    # -- embedding selection (tiny, pure JAX) ----------------------------
    def get_embeddings_for_query(self, length):
        pad_length = max(length - self.max_relative_pos, 0)
        start_pos = max(self.max_relative_pos - length, 0)
        emb = self.embeddings
        axis = emb.ndim - 3  # the num_embeddings axis
        pad_cfg = [(0, 0)] * emb.ndim
        if self.unmasked:
            pad_cfg[axis] = (pad_length, pad_length)
            padded = jnp.pad(emb, pad_cfg)
            used = jax.lax.slice_in_dim(padded, start_pos,
                                        start_pos + 2 * length - 1, axis=axis)
        else:
            pad_cfg[axis] = (pad_length, 0)
            padded = jnp.pad(emb, pad_cfg)
            used = jax.lax.slice_in_dim(padded, start_pos,
                                        start_pos + length, axis=axis)
        return used

    # -- positional logits in absolute indexing --------------------------
    def _positional_logits_absolute(self, query, rel_emb, L):
        D = self.embedding_dim
        BH = query.shape[1]
        M = 2 * L - 1 if self.unmasked else L
        col_off = 0 if self.unmasked else 1     # masked: zero column in front
        M_out = M + 1                           # masked: L+1 cols, unmasked: 2L cols
        pad_len = max(L - self.max_relative_pos, 0)
        cdt = self.compute_dtype or query.dtype

        # hoisted -1e8 length-mask: one f32 row, resident across the grid
        if pad_len > 0:
            col = jnp.arange(M_out)[None, :]
            if self.unmasked:
                masked_cols = (col < pad_len) | ((col >= M - pad_len) & (col < M))
            else:
                masked_cols = (col >= col_off) & (col < col_off + pad_len)
            bias = jnp.where(masked_cols, jnp.float32(-1e8), jnp.float32(0.0))
        else:
            bias = jnp.zeros((1, M_out), jnp.float32)

        if self.heads_share_embeddings:
            # merge (batch*heads, L) rows -> one big (R, D) @ (D, M_out) stream
            q_rd = jnp.transpose(query, (1, 0, 2)).reshape(BH * L, D).astype(cdt)
            e_dm = jnp.zeros((D, M_out), cdt).at[:, col_off:col_off + M].set(
                rel_emb.T.astype(cdt))
            out = _logits_shared(q_rd, e_dm, bias, self.logits_dtype, self.max_rows)
            y = out.reshape(BH, L, M_out)
        else:
            H = self.num_heads
            B = BH // H
            # only wrapper-side transpose: D-narrow query -> (B, H, L, D)
            q_bhld = jnp.transpose(query.reshape(L, B, H, D), (1, 2, 0, 3)).astype(cdt)
            # pre-transposed, zero-padded embeddings: cols [col_off, col_off+M)
            # hold the real table, the extra column is zero (absolute-index pad)
            e_hdm = jnp.zeros((H, D, M_out), cdt).at[:, :, col_off:col_off + M].set(
                jnp.transpose(rel_emb, (0, 2, 1)).astype(cdt))
            out = _logits_per_head(q_bhld, e_hdm, bias, self.logits_dtype,
                                   self.max_rows)
            y = out.reshape(BH, L, M_out)
        return self._relative_to_absolute(y, L)

    def _relative_to_absolute(self, y, L):
        """Relative->absolute re-indexing on (BH, L, M_out) logits whose zero pad
        column is already in place (col 0 masked / col 2L-1 unmasked)."""
        BH = y.shape[0]
        if self.unmasked:
            flat = y.reshape(BH, 2 * L * L)                       # free view
            z = jax.lax.slice_in_dim(flat, L - 1, L - 1 + L * (2 * L - 1), axis=1)
            return z.reshape(BH, L, 2 * L - 1)[:, :, :L]
        else:
            return y.reshape(BH, L + 1, L)[:, 1:, :]              # free view + slice


# ---------------------------------------------------------------------------
# Pure-JAX reference (mirrors the PyTorch forward exactly) for the self-check
# ---------------------------------------------------------------------------
def _reference_forward(mod, query):
    L = query.shape[0]
    used = mod.get_embeddings_for_query(L)
    rel = used[..., 0]
    hp = jax.lax.Precision.HIGHEST
    if mod.heads_share_embeddings:
        logits = jnp.einsum('lbd,md->lbm', query, rel, precision=hp)
    else:
        q = query.reshape(L, -1, mod.num_heads, mod.embedding_dim)
        logits = jnp.einsum('lbhd,hmd->lbhm', q, rel, precision=hp)
        logits = logits.reshape(L, -1, logits.shape[-1])
    pad_len = max(L - mod.max_relative_pos, 0)
    if pad_len > 0:
        logits = logits.at[:, :, :pad_len].add(-1e8)
        if mod.unmasked:
            logits = logits.at[:, :, -pad_len:].add(-1e8)
    BH = logits.shape[1]
    if mod.unmasked:
        x = jnp.pad(logits, ((0, 0), (0, 0), (0, 1)))
        x = jnp.transpose(x, (1, 0, 2)).reshape(BH, L * 2 * L)
        x = jnp.pad(x, ((0, 0), (0, L - 1))).reshape(BH, L + 1, 2 * L - 1)
        return x[:, :L, L - 1:]
    else:
        x = jnp.pad(logits, ((0, 0), (0, 0), (1, 0)))
        x = jnp.transpose(x, (1, 0, 2)).reshape(BH, L + 1, L)
        return x[:, 1:, :]


if __name__ == "__main__":
    root = jax.random.PRNGKey(0)
    configs = [
        dict(max_relative_pos=8, num_heads=4, embedding_dim=32, batch=2, length=8,
             unmasked=False, heads_share_embeddings=False, add_to_values=False),
        dict(max_relative_pos=8, num_heads=4, embedding_dim=32, batch=2, length=12,
             unmasked=True, heads_share_embeddings=False, add_to_values=False),
        dict(max_relative_pos=8, num_heads=4, embedding_dim=32, batch=2, length=10,
             unmasked=False, heads_share_embeddings=True, add_to_values=True,
             max_rows=24),   # exercises merged-row path with multiple/ragged row tiles
        dict(max_relative_pos=16, num_heads=2, embedding_dim=32, batch=2, length=40,
             unmasked=False, heads_share_embeddings=False, add_to_values=False,
             max_rows=16),   # exercises per-head path with row tiling + ragged block
    ]

    for i, cfg in enumerate(configs):
        k_emb, k_q = jax.random.split(jax.random.fold_in(root, i))
        mod = LearnedRelativePositionalEmbedding(
            cfg["max_relative_pos"], cfg["num_heads"], cfg["embedding_dim"],
            unmasked=cfg["unmasked"],
            heads_share_embeddings=cfg["heads_share_embeddings"],
            add_to_values=cfg["add_to_values"], key=k_emb,
            max_rows=cfg.get("max_rows"))

        L = cfg["length"]
        BH = cfg["batch"] * cfg["num_heads"]
        query = jax.random.normal(k_q, (L, BH, cfg["embedding_dim"]),
                                  dtype=jnp.float32)

        # round test data to bf16-representable f32 so the tight tolerance is
        # robust to the bf16-compute / f32-accumulate kernel path
        query = query.astype(jnp.bfloat16).astype(jnp.float32)
        mod.embeddings = mod.embeddings.astype(jnp.bfloat16).astype(jnp.float32)

        logits, values_emb = mod(query)
        logits = jax.block_until_ready(logits)

        assert logits.shape == (BH, L, L), (i, logits.shape)
        if cfg["add_to_values"]:
            assert values_emb is not None
            assert bool(jnp.all(jnp.isfinite(values_emb)))
        else:
            assert values_emb is None

        ref = _reference_forward(mod, query)
        assert bool(jnp.all(jnp.isfinite(logits)))
        assert bool(jnp.allclose(logits, ref, atol=1e-4, rtol=1e-5)), (
            i, float(jnp.max(jnp.abs(logits - ref))))

    print("KERNEL_OK")
</pallas_src>

<mosaic_0001>
module attributes {stable_mosaic.version = 11 : i64} {
  func.func @_pos_logits_kernel(%arg0: i32, %arg1: i32, %arg2: i32, %arg3: memref<1x1x8x32xbf16, #tpu.memory_space<vmem>>, %arg4: memref<1x32x9xbf16, #tpu.memory_space<vmem>>, %arg5: memref<1x9xf32, #tpu.memory_space<vmem>>, %arg6: memref<1x1x8x9xf32, #tpu.memory_space<vmem>>) attributes {dimension_semantics = [#tpu.dimension_semantics<parallel>, #tpu.dimension_semantics<parallel>, #tpu.dimension_semantics<parallel>], iteration_bounds = array<i64: 4, 2, 1>, scalar_prefetch = 0 : i64, scratch_operands = 0 : i64, tpu.core_type = #tpu.core_type<tc>, window_params = [{transform_indices = @transform_0, window_bounds = array<i64: 1, 1, 8, 32>}, {transform_indices = @transform_1, window_bounds = array<i64: 1, 32, 9>}, {pipeline_mode = #tpu.pipeline_mode<synchronous>, transform_indices = @transform_2, window_bounds = array<i64: 1, 9>}, {transform_indices = @transform_3, window_bounds = array<i64: 1, 1, 8, 9>}]} {
    %c0 = arith.constant 0 : index
    %c0_0 = arith.constant 0 : index
    %c0_1 = arith.constant 0 : index
    %c0_2 = arith.constant 0 : index
    %0 = vector.load %arg3[%c0, %c0_0, %c0_1, %c0_2] : memref<1x1x8x32xbf16, #tpu.memory_space<vmem>>, vector<1x1x8x32xbf16>
    %1 = vector.shape_cast %0 : vector<1x1x8x32xbf16> to vector<8x32xbf16>
    %c0_3 = arith.constant 0 : index
    %c0_4 = arith.constant 0 : index
    %c0_5 = arith.constant 0 : index
    %2 = vector.load %arg4[%c0_3, %c0_4, %c0_5] : memref<1x32x9xbf16, #tpu.memory_space<vmem>>, vector<1x32x9xbf16>
    %3 = vector.shape_cast %2 : vector<1x32x9xbf16> to vector<32x9xbf16>
    %cst = arith.constant dense<0.000000e+00> : vector<8x9xf32>
    %4 = tpu.matmul %1, %3, %cst {dimension_numbers = #tpu.dot_dimension_numbers<[1], [0], [0], [1], [0, 0, 1, 1], [], []>} : vector<8x32xbf16>, vector<32x9xbf16>, vector<8x9xf32> -> vector<8x9xf32>
    %c0_6 = arith.constant 0 : index
    %c0_7 = arith.constant 0 : index
    %5 = vector.load %arg5[%c0_6, %c0_7] : memref<1x9xf32, #tpu.memory_space<vmem>>, vector<1x9xf32>
    %6 = vector.broadcast %5 : vector<1x9xf32> to vector<8x9xf32>
    %7 = arith.addf %4, %6 : vector<8x9xf32>
    %c0_8 = arith.constant 0 : index
    %c0_9 = arith.constant 0 : index
    %c0_10 = arith.constant 0 : index
    %c0_11 = arith.constant 0 : index
    %8 = vector.load %arg6[%c0_8, %c0_9, %c0_10, %c0_11] : memref<1x1x8x9xf32, #tpu.memory_space<vmem>>, vector<1x1x8x9xf32>
    %9 = vector.shape_cast %8 : vector<1x1x8x9xf32> to vector<8x9xf32>
    %10 = vector.shape_cast %7 : vector<8x9xf32> to vector<1x1x8x9xf32>
    tpu.vector_store %arg6[%c0_8, %c0_9, %c0_10, %c0_11], %10 {strides = array<i32>} : memref<1x1x8x9xf32, #tpu.memory_space<vmem>>, vector<1x1x8x9xf32>,
    return
  }
  func.func @transform_0(%arg0: i32, %arg1: i32, %arg2: i32) -> (i32, i32, i32, i32) {
    %c0_i32 = arith.constant 0 : i32
    %c0_i32_0 = arith.constant 0 : i32
    return %arg1, %arg0, %arg2, %c0_i32 : i32, i32, i32, i32
  }
  func.func @transform_1(%arg0: i32, %arg1: i32, %arg2: i32) -> (i32, i32, i32) {
    %c0_i32 = arith.constant 0 : i32
    %c0_i32_0 = arith.constant 0 : i32
    %c0_i32_1 = arith.constant 0 : i32
    return %arg0, %c0_i32, %c0_i32_0 : i32, i32, i32
  }
  func.func @transform_2(%arg0: i32, %arg1: i32, %arg2: i32) -> (i32, i32) {
    %c0_i32 = arith.constant 0 : i32
    %c0_i32_0 = arith.constant 0 : i32
    %c0_i32_1 = arith.constant 0 : i32
    return %c0_i32, %c0_i32_0 : i32, i32
  }
  func.func @transform_3(%arg0: i32, %arg1: i32, %arg2: i32) -> (i32, i32, i32, i32) {
    %c0_i32 = arith.constant 0 : i32
    %c0_i32_0 = arith.constant 0 : i32
    return %arg1, %arg0, %arg2, %c0_i32 : i32, i32, i32, i32
  }
}

</mosaic_0001>

<bundles_post_ra>
// kernel: tpu_custom_call.1
= control target key start
LH: loop header
LB: loop body
LE: loop exit
PB: predicated region body
PF: predicated region fallthrough
CT: control target
= control target key end

     0   :  { %8 = vsyncpa [#allocation3], 0  ;;  %s784_s0 = inlined_call_operand.vmem [shape: bf16[2,4,8,32], index: 0, kind: input, shape index: {}]   ;;  %s785_s1 = inlined_call_operand.vmem [shape: bf16[4,32,9], index: 1, kind: input, shape index: {}]   ;;  %s786_s2 = inlined_call_operand.vmem [shape: f32[1,9], index: 2, kind: input, shape index: {}]   ;;  %s787_s3 = inlined_call_operand.hbm [shape: f32[2,4,8,9], index: 3, kind: output, shape index: {}]  }
   0x1   :  { %10 = vsyncpa [#allocation3 + $0x1], 0  ;;  %s642_s12 = smov 0   ;;  %s644_s13 = smov 0  }
   0x2   :  { %s646_s14 = smov 0   ;;  %s648_s15 = smov 0  }
   0x3   :  { %s650_s16 = smov 0   ;;  %s652_s17 = smov 0  }
   0x4   :  { %s654_s18 = smov 0   ;;  %s656_s19 = smov 0  }
   0x5 LB: > { %s419_s20 = sadd.s32 4294967295, %s617_s19   ;;  %s420_s21 = sadd.s32 4294967294, %s617_s19   ;;  %s617_s19 = sphi %s656_s19, %s16_s19   ;;  %s613_s18 = sphi %s654_s18, %s796_s18   ;;  %s609_s17 = sphi %s652_s17, %s795_s17   ;;  %s605_s16 = sphi %s650_s16, %s794_s16   ;;  %s601_s15 = sphi %s648_s15, %s793_s15   ;;  %s597_s14 = sphi %s646_s14, %s792_s14   ;;  %s593_s13 = sphi %s644_s13, %s791_s13   ;;  %s589_s12 = sphi %s642_s12, %s790_s12  }
   0x6   : > { %s31_s22 = sadd.s32 1, %s609_s17  ;;  %s35_s23 = sadd.s32 1, %s613_s18 }
   0x7   : > { %p33_p0 = scmp.ge.s32.totalorder %s31_s22, 2  ;;  %p133_p1 = scmp.ne.s32.totalorder %s597_s14, %s593_s13 }
   0x8   : > { %p134_p2 = scmp.eq.s32.totalorder %s419_s20, 7  ;;  %p139_p5 = scmp.ne.s32.totalorder %s593_s13, %s589_s12 }
   0x9   : > { %s798_s22 = smov (%p33_p0, %s31_s22), 0  ;;  %s800_s23 = smov (!%p33_p0, %s35_s23), %s613_s18 }
   0xa   : > { %s116_s24 = ssub.s32 %s609_s17, %s798_s22  ;;  %p693_p3 = por %p134_p2, %p133_p1 }
   0xb   : > { %p37_p4 = scmp.ge.s32.totalorder %s800_s23, 4  ;;  %p140_p6 = scmp.eq.s32.totalorder %s420_s21, 7 }
   0xc   : > { %p423_p7 = scmp.ge.s32.totalorder %s617_s19, 1  ;;  %p183_p9 = scmp.lt.s32.totalorder %s617_s19, 9 }
   0xd   : > { %s802_s23 = smov (%p37_p4, %s800_s23), 0  ;;  %p702_p8 = por %p140_p6, %p139_p5 }
   0xe   : > { %s117_s27 = ssub.s32 %s613_s18, %s802_s23  ;;  %s123_s28 = sadd.s32 1, %s597_s14 }
   0xf   : > { %s118_s29 = sor.u32 %s117_s27, %s116_s24  ;;  %p184_p10 = pnand %p423_p7, %p183_p9 }
  0x10   : > { %p121_p11 = scmp.eq.s32.totalorder %s118_s29, 0  ;;  %p220_p12 = scmp.lt.s32.totalorder (!%p184_p10), %s605_s16, 3 }
  0x11   : > { %187 = sbr.rel (%p184_p10) target bundleno = 243 (0xf3), region = 32  ;;  %p218_p13 = scmp.lt.s32.totalorder (!%p184_p10), %s601_s15, 1 }
  0x12   : > { %s711_s30 = scalar_select %p121_p11, %s597_s14, %s123_s28  }
  0x13   : > { %s215_s28 = sand.u32 (!%p184_p10), 1, %s593_s13   ;;  %s434_s7 = sshll.u32 (!%p184_p10), %s601_s15, 2 }
  0x14   : > { %s424_s29 = sshll.u32 (!%p184_p10), %s215_s28, 3  ;;  %s621_s24 = smov (!%p184_p10), [#allocation2]  }
  0x16   : > { %v619_v0 = vmov 0.0   ;;  %vm620_vm0 = vmmov 0   ;;  %s221_s4 = scalar_select %p220_p12, %s605_s16, 3  ;;  %vm259_vm1 = vcmask 261120   ;;  %v429_v4 = vld [vmem:[%s786_s2] ss:$0 sm:$0xff] }
  0x17   : > { %442 = vmatprep.subr.bf16.mxu0 %v619_v0  ;;  %446 = vmatprep.mubr.msk.bf16.mxu0 %vm620_vm0, %v619_v0  ;;  %s219_s5 = scalar_select %p218_p13, %s601_s15, 1  ;;  %vm303_vm2 = vcmask 72704  }
  0x18   : > { %s438_s6 = sshll.u32 %s221_s4, 4  ;;  %s306_s15 = scalar_lea.sflag [#allocation3], %s215_s28 }
  0x19   : > { %s233_s9 = scalar_lea.vmem %s785_s1, %s438_s6  ;;  %s425_s10 = sshll.u32 %s219_s5, 2 }
  0x1a   : > { %v523_v1 = vld [vmem:[%s233_s9 + $0x8] sm:$0xff]   ;;  %s226_s11 = sadd.s32 %s425_s10, %s221_s4  ;;  %v524_v2 = vld [vmem:[%s233_s9] sm:$0xff]   ;;  %s318_s6 = sadd.s32 %s605_s16, %s434_s7 }
  0x1b   : > { %s426_s20 = sshll.u32 %s226_s11, 2  ;;  %443 = vmatpush3.bf16.msra.mxu0 %v523_v1  ;;  %s435_s4 = sshll.u32 %s318_s6, 7 }
  0x1c   : > { %444 = vmatprep.subr.bf16.mxu0 %v619_v0  ;;  %s228_s27 = scalar_lea.vmem %s784_s0, %s426_s20  ;;  %s217_s9 = scalar_lea.vmem [#allocation2], %s424_s29 }
  0x1d   : > { %v235_v3 = vld [vmem:[%s228_s27] sm:$0xf]  ;;  %s322_s10 = sshll.u32 %s217_s9, 4  ;;  %s732_s21 = scalar_lea.hbm %s787_s3, %s435_s4  ;;  %s734_s10 = int_to_ptr.vmem [resolvable:$true] %s322_s10 }
  0x1e   : > { %s525_s16 = scalar_lea.vmem %s734_s10, 128  ;;  %s529_s27 = sshll.u32 %s621_s24, 4  ;;  %s530_s27 = int_to_ptr.vmem [resolvable:$false] %s529_s27 }
  0x1f   : > { %445 = vmatpush3.bf16.msra.mxu0 %v524_v2  ;;  %p526_p0 = scmp.ne.s32.totalorder %s734_s10, %s525_s16  ;;  %s531_s29 = scalar_lea.vmem %s530_s27, 256 }
  0x20   : > { %p532_p4 = scmp.lt.s32.totalorder %s734_s10, %s530_s27  ;;  %p533_p5 = scmp.lt.s32.totalorder %s531_s29, %s525_s16 }
  0x21   : > { %p527_p1 = pnand %p526_p0, %p693_p3 }
  0x22   : > { %447 = vmatmul.mubr.msk.bf16.vlgmr.msra.gmra.mxu0 %vm259_vm1, %v235_v3  ;;  %p534_p6 = por %p533_p5, %p532_p4 }
  0x23   : > { %p528_p2 = pneg %p527_p1 }
  0x25   : > { %p535_p7 = pnand %p534_p6, %p528_p2 }
  0xe2   : > { %v297_v5 = vpop.f32.mrf.mxu0 }
  0xe3   : > { %v298_v6 = vadd.f32 %v429_v4, %v297_v5 }
  0xe4   : > { %v448_v7 = vpop.f32.mrf.mxu0 }
  0xe5   : > { %304 = vst.msk [vmem:[%s217_s9] sm:$0xff] %vm303_vm2, %v298_v6 }
  0xe6   : > { %v300_v8 = vpop.f32.mrf.mxu0 }
  0xe7   : > { %538 = shalt.err (!%p535_p7)
}
  0xe8   : > { %s539_s7 = scalar_lea.hbm %s732_s21, 128  ;;  %s543_s8 = scalar_lea.hbm %s787_s3, 1024 }
  0xe9   : > { %p540_p9 = scmp.ne.s32.totalorder %s732_s21, %s539_s7  ;;  %p544_p12 = scmp.lt.s32.totalorder %s732_s21, %s787_s3 }
  0xea   : > { %p545_p13 = scmp.lt.s32.totalorder %s543_s8, %s539_s7 }
  0xeb   : > { %p541_p10 = pnand %p540_p9, %p693_p3 }
  0xec   : > { %p546_p0 = por %p545_p13, %p544_p12 }
  0xed   : > { %p542_p11 = pneg %p541_p10 }
  0xef   : > { %p547_p1 = pnand %p546_p0, %p542_p11 }
  0xf1   : > { %550 = shalt.err (!%p547_p1)
}
  0xf2   : > { %450 = dma.vmem_to_hbm [thread:$0]  (%p693_p3), %s734_s10, 128, %s732_s21, %s306_s15   ;;  %v449_v9 = vpop.f32.mrf.mxu0 }
  0xf3 PF: > { %p456_p2 = scmp.ge.s32.totalorder %s617_s19, 2  ;;  %s334_s9 = sand.u32 1, %s589_s12  }
  0xf4   : > { %s335_s11 = scalar_lea.sflag [#allocation3], %s334_s9 }
  0xf5   : > { %p453_p4 = pnand %p456_p2, %p702_p8 }
  0xf7   : > { %p454_p5 = pneg %p453_p4 }
  0xf9   : > { %584 = dma.done.wait (%p454_p5), %s335_s11, 128  }
  0xfa   : > { %586 = vsyncadd (%p454_p5), %s335_s11, 4294967168  ;;  %s16_s19 = sadd.s32 1, %s617_s19   ;;  %s790_s12 = smov %s593_s13 }
  0xfb   : > { %p13_p6 = scmp.ge.s32.totalorder %s16_s19, 10   ;;  %s791_s13 = smov %s597_s14 }
  0xfc   : > { %s792_s14 = smov %s711_s30  ;;  %s793_s15 = smov %s609_s17 }
  0xfd   : > { %s794_s16 = smov %s613_s18  ;;  %s795_s17 = smov %s798_s22 }
  0xfe   : > { %s796_s18 = smov %s802_s23  ;;  %15 = sbr.rel (!%p13_p6) target bundleno = 5 (0x5), region = 70 }
 0x103   :  { %340 = vsyncpa [#allocation3], 1 }
 0x104   :  { %342 = vsyncpa [#allocation3 + $0x1], 1 }

</bundles_post_ra>
